<compile_context>
chip_gen: v5e
topology: v5e:2x2
jax: 0.10.0
libtpu: 0.0.40
codegen_flags: <defaults>
</compile_context>

<pallas_src>
import jax
import jax.numpy as jnp
from jax.experimental import pallas as pl
from jax.experimental.pallas import tpu as pltpu


def _fused_kernel(s_ref, x1_ref, inp3_ref, x2_ref, o_ref):
    # v1 = mm(inp1, inp2): (1,1)@(1,1) -> scalar product, read from SMEM.
    v1 = s_ref[0] * s_ref[1]

    # W = inp3 @ x2 (associativity: (v2 @ inp3) @ x2 == v2 @ (inp3 @ x2)).
    # W does not depend on the SMEM scalar read, so scalar unit and MXU overlap.
    w = jnp.dot(inp3_ref[...], x2_ref[...], preferred_element_type=jnp.float32)

    # v2 = v1 + x1 (single VPU broadcast-add), then one matmul with W.
    v2 = x1_ref[...] + v1
    o_ref[...] = jnp.dot(v2, w, preferred_element_type=jnp.float32)


def model_forward(x1, x2, inp1, inp2, inp3):
    M, K = x1.shape
    K2, N = inp3.shape
    N2, P = x2.shape
    assert K == K2 and N == N2, "matmul chain shape mismatch"

    # Merge the two (1,1) scalars into one 1-D SMEM operand (one DMA).
    scalars = jnp.concatenate([inp1.reshape(1), inp2.reshape(1)])

    smem_spec = pl.BlockSpec(memory_space=pltpu.MemorySpace.SMEM)
    vmem_spec = pl.BlockSpec(memory_space=pltpu.MemorySpace.VMEM)

    flops = 2 * K * N * P + 2 * M * K * P + M * K + 1
    bytes_accessed = 4 * (2 + M * K + K * N + N * P + M * P)

    return pl.pallas_call(
        _fused_kernel,
        out_shape=jax.ShapeDtypeStruct((M, P), jnp.float32),
        in_specs=[smem_spec, vmem_spec, vmem_spec, vmem_spec],
        out_specs=vmem_spec,
        cost_estimate=pl.CostEstimate(
            flops=flops, transcendentals=0, bytes_accessed=bytes_accessed),
    )(scalars, x1, inp3, x2)


model_forward = jax.jit(model_forward)


if __name__ == "__main__":
    key = jax.random.PRNGKey(0)
    k1, k2, k3, k4, k5 = jax.random.split(key, 5)

    inp1 = jax.random.normal(k1, (1, 1), dtype=jnp.float32)
    inp2 = jax.random.normal(k2, (1, 1), dtype=jnp.float32)
    x1   = jax.random.normal(k3, (5, 10), dtype=jnp.float32)   # (M, K)
    inp3 = jax.random.normal(k4, (10, 5), dtype=jnp.float32)   # (K, N)
    x2   = jax.random.normal(k5, (5, 10), dtype=jnp.float32)   # (N, P) -- repaired shape

    out = jax.block_until_ready(model_forward(x1, x2, inp1, inp2, inp3))

    # Reference: identical semantics to the torch.mm chain.
    v1 = inp1 @ inp2
    v2 = v1 + x1
    ref = (v2 @ inp3) @ x2

    assert out.shape == ref.shape
    assert jnp.allclose(out, ref, atol=1e-4, rtol=1e-4)

    print("KERNEL_OK")
</pallas_src>

<mosaic_0001>
module attributes {stable_mosaic.version = 11 : i64} {
  func.func @_fused_kernel(%arg0: memref<2xf32, #tpu.memory_space<smem>>, %arg1: memref<5x10xf32, #tpu.memory_space<vmem>>, %arg2: memref<10x5xf32, #tpu.memory_space<vmem>>, %arg3: memref<5x10xf32, #tpu.memory_space<vmem>>, %arg4: memref<5x10xf32, #tpu.memory_space<vmem>>) attributes {dimension_semantics = [], scalar_prefetch = 0 : i64, scratch_operands = 0 : i64, tpu.core_type = #tpu.core_type<tc>} {
    %c0 = arith.constant 0 : index
    %0 = memref.load %arg0[%c0] : memref<2xf32, #tpu.memory_space<smem>>
    %c1 = arith.constant 1 : index
    %1 = memref.load %arg0[%c1] : memref<2xf32, #tpu.memory_space<smem>>
    %2 = arith.mulf %0, %1 : f32
    %c0_0 = arith.constant 0 : index
    %c0_1 = arith.constant 0 : index
    %3 = vector.load %arg2[%c0_0, %c0_1] : memref<10x5xf32, #tpu.memory_space<vmem>>, vector<10x5xf32>
    %c0_2 = arith.constant 0 : index
    %c0_3 = arith.constant 0 : index
    %4 = vector.load %arg3[%c0_2, %c0_3] : memref<5x10xf32, #tpu.memory_space<vmem>>, vector<5x10xf32>
    %cst = arith.constant dense<0.000000e+00> : vector<10x10xf32>
    %5 = tpu.matmul %3, %4, %cst {dimension_numbers = #tpu.dot_dimension_numbers<[1], [0], [0], [1], [0, 0, 1, 1], [], []>} : vector<10x5xf32>, vector<5x10xf32>, vector<10x10xf32> -> vector<10x10xf32>
    %c0_4 = arith.constant 0 : index
    %c0_5 = arith.constant 0 : index
    %6 = vector.load %arg1[%c0_4, %c0_5] : memref<5x10xf32, #tpu.memory_space<vmem>>, vector<5x10xf32>
    %7 = vector.broadcast %2 : f32 to vector<5x10xf32>
    %8 = arith.addf %6, %7 : vector<5x10xf32>
    %cst_6 = arith.constant dense<0.000000e+00> : vector<5x10xf32>
    %9 = tpu.matmul %8, %5, %cst_6 {dimension_numbers = #tpu.dot_dimension_numbers<[1], [0], [0], [1], [0, 0, 1, 1], [], []>} : vector<5x10xf32>, vector<10x10xf32>, vector<5x10xf32> -> vector<5x10xf32>
    %c0_7 = arith.constant 0 : index
    %c0_8 = arith.constant 0 : index
    %10 = vector.load %arg4[%c0_7, %c0_8] : memref<5x10xf32, #tpu.memory_space<vmem>>, vector<5x10xf32>
    tpu.vector_store %arg4[%c0_7, %c0_8], %9 {strides = array<i32>} : memref<5x10xf32, #tpu.memory_space<vmem>>, vector<5x10xf32>,
    return
  }
}

</mosaic_0001>

<bundles_post_ra>
// kernel: model_forward.1
= control target key start
LH: loop header
LB: loop body
LE: loop exit
PB: predicated region body
PF: predicated region fallthrough
CT: control target
= control target key end

     0   :  { %9 = vsyncpa [#allocation4], 0  ;;  %s215_s0 = inlined_call_operand.vmem [shape: f32[2], index: 0, kind: input, shape index: {}]   ;;  %s216_s1 = inlined_call_operand.vmem [shape: f32[5,10], index: 1, kind: input, shape index: {}]   ;;  %s217_s2 = inlined_call_operand.vmem [shape: f32[10,5], index: 2, kind: input, shape index: {}]   ;;  %s218_s3 = inlined_call_operand.vmem [shape: f32[5,10], index: 3, kind: input, shape index: {}]   ;;  %s219_s4 = inlined_call_operand.hbm [shape: f32[5,10], index: 4, kind: output, shape index: {}]  }
   0x1   :  { %10 = vsyncpa [#allocation3], 0  ;;  %s16_s17 = sshll.u32 %s215_s0, 4  ;;  %s170_s18 = smov [#allocation2]   ;;  %s17_s17 = int_to_ptr.vmem [resolvable:$true] %s16_s17 }
   0x2   :  { %19 = dma.vmem_to_smem %s17_s17, 16, %s170_s18, [#allocation4]  }
   0x3   :  { %166 = dma.done.wait [#allocation4], 16  }
   0x4   :  { %167 = vsyncadd [#allocation4], 4294967280 }
   0x5   :  { %30 = sfence }
   0x6   :  { %v36_v0 = vld [vmem:[%s218_s3] sm:$0x1f]  ;;  %vm44_vm0 = vcmask 1044480   ;;  %v35_v1 = vld [vmem:[%s217_s2 + $0x8] sm:$0x3]  ;;  %vm37_vm1 = vcmask 39936  }
   0x7   :  { %127 = vmatpush.msk.msra.mxu2 %vm44_vm0, %v36_v0  ;;  %122 = vmatpush.msk.msra.mxu0 %vm44_vm0, %v36_v0  ;;  %v34_v2 = vld [vmem:[%s217_s2] sm:$0xff]  ;;  %s31_s24 = sld [smem:[#allocation2]]  ;;  %vm78_vm2 = vcmask 1041408   ;;  %vm74_vm3 = vcmask 80896   ;;  %s171_s3 = smov [#allocation5]   ;;  %vm102_vm4 = vcmask 77824  }
   0x8   :  { %124 = vmatmul.msk.f32.vlgmr.msra.gmra.mxu2 %vm37_vm1, %v35_v1  ;;  %123 = vmatmul.msk.f32.vlgmr.msra.gmra.mxu0 %vm37_vm1, %v34_v2  ;;  %s121_s25 = sld [smem:[#allocation2 + $0x1]]  ;;  %v71_v3 = vld [vmem:[%s216_s1] sm:$0x1f]  ;;  %s109_s2 = sshll.u32 %s171_s3, 4  ;;  %s110_s2 = int_to_ptr.vmem [resolvable:$true] %s109_s2 }
   0x9   :  { %s111_s5 = sshll.u32 %s219_s4, 4  ;;  %s112_s5 = int_to_ptr.hbm [resolvable:$true] %s111_s5 }
   0xe   :  { %s33_s26 = smul.f32 %s121_s25, %s31_s24 }
  0x10   :  { %v72_v4 = vstv %s33_s26 }
  0x11   :  { %v73_v7 = vadd.f32 %v72_v4, %v71_v3 }
  0x85   :  { %v65_v6 = vpop.f32.mrf.mxu0 }
  0x8b   :  { %v68_v5 = vpop.f32.mrf.mxu2 }
  0x8c   :  { %125 = vmatpush.msk.msra.mxu1 %vm78_vm2, %v68_v5 }
  0x8e   :  { %97 = vmatpush.msra.mxu1 %v65_v6 }
  0x8f   :  { %126 = vmatmul.msk.f32.vlgmr.msra.gmra.mxu1 %vm74_vm3, %v73_v7 }
 0x10c   :  { %v99_v8 = vpop.f32.mrf.mxu1 }
 0x10d   :  { %103 = vst.msk [vmem:[#allocation5] sm:$0x1f] %vm102_vm4, %v99_v8 }
 0x10e   :  { %114 = dma.vmem_to_hbm [thread:$0]  %s110_s2, 128, %s112_s5, [#allocation3]  }
 0x10f   :  { %168 = dma.done.wait [#allocation3], 128  }
 0x110   :  { %169 = vsyncadd [#allocation3], 4294967168 }
 0x111   :  { %119 = vsyncpa [#allocation3], 1 }
 0x112   :  { %120 = vsyncpa [#allocation4], 1 }

</bundles_post_ra>
